<compile_context>
chip_gen: v5e
topology: v5e:2x2
jax: 0.10.0
libtpu: 0.0.40
codegen_flags: <defaults>
</compile_context>

<pallas_src>
import functools

import jax
import jax.numpy as jnp
from jax.experimental import pallas as pl
from jax.experimental.pallas import tpu as pltpu


def _round_up(x, m):
    return ((x + m - 1) // m) * m


def _detect_tpu():
    """(physical VMEM bytes per core, TensorCores per chip) with safe fallbacks."""
    vmem_cap = 64 * 1024 * 1024            # conservative default (v7x per-TC)
    n_cores = 1
    try:
        vmem_cap = int(pltpu.get_tpu_info().vmem_capacity_bytes)
    except Exception:
        pass
    try:
        if "v7" in jax.devices()[0].device_kind.lower():
            n_cores = 2                    # v7x: 2 TensorCores per chip
    except Exception:
        pass
    return vmem_cap, n_cores


# ----------------------------------------------------------------------------
# Pallas kernel: BERT-style "SUM" fusion
#   out[n, h] = (1/T) * sum_r x[n, r, h]   with r over the fused
#   (last-`layers_kept` layers) x (tokens) axis prepared by the wrapper.
# ----------------------------------------------------------------------------
def fusion_kernel(x_ref, o_ref, *, inv_tokens):
    # Accumulate in f32 directly — no named full-tile f32 upcast intermediate.
    o_ref[...] = jnp.sum(x_ref[...], axis=1, dtype=jnp.float32) * inv_tokens


def fuse_embeddings(hidden_states, *, layers_kept=4, vmem_budget_bytes=None):
    """hidden_states: (N, L, T, H) bf16/f32 -> (N, H) f32 sentence embeddings."""
    N, L, T, H = hidden_states.shape
    layers_kept = min(layers_kept, L)      # robust if L < 4 (matches token[-4:])
    R = layers_kept * T

    # Slice to the kept layers only (reads/writes only useful bytes) and fuse
    # (layer, token) into one sublane-dense row axis; the reshape of the
    # contiguous slice is free.
    x = hidden_states if layers_kept == L else hidden_states[:, L - layers_kept:]
    x = x.reshape(N, R, H)

    vmem_cap, n_cores = _detect_tpu()
    headroom = 4 * 1024 * 1024
    if vmem_budget_bytes is None:
        # ~half of physical VMEM for this call's double-buffered blocks:
        # 128 MiB parts (v5e/v6e) get ~60 MiB, v7x (64 MiB/TC) stays ~28 MiB.
        vmem_budget_bytes = max(16 * 1024 * 1024, vmem_cap // 2)
    vmem_budget_bytes = min(vmem_budget_bytes, vmem_cap - 2 * headroom)

    in_bytes = x.dtype.itemsize
    # VMEM bytes per node row: double-buffered input rows + double-buffered
    # f32 output row, using lane/sublane-padded tile sizes.
    h_lane = _round_up(H, 128)
    r_sub = _round_up(R, max(8, 32 // in_bytes))
    per_node = 2 * r_sub * h_lane * in_bytes + 2 * h_lane * 4

    node_block = max(8, (vmem_budget_bytes // per_node) // 8 * 8)
    if node_block >= N:
        node_block = N                     # one full-extent block -> grid=(1,)
        num_blocks = 1
    else:
        num_blocks = pl.cdiv(N, node_block)

    # v7x only: shard the node axis across both TensorCores; keep the block
    # count a multiple of 2 where possible so neither core idles.
    semantics = ("parallel",)
    if n_cores > 1 and num_blocks >= n_cores:
        if num_blocks % n_cores:
            nb = max(8, _round_up(pl.cdiv(N, _round_up(num_blocks, n_cores)), 8))
            if nb < N:
                node_block, num_blocks = nb, pl.cdiv(N, nb)
        semantics = (pltpu.CORE_PARALLEL,)

    # Guard: declared VMEM limit always covers the chosen blocks + headroom,
    # and never exceeds this generation's physical VMEM.
    vmem_limit = int(min(vmem_cap - headroom,
                         max(16 * 1024 * 1024, node_block * per_node + headroom)))

    kernel = functools.partial(fusion_kernel, inv_tokens=1.0 / T)

    out = pl.pallas_call(
        kernel,
        out_shape=jax.ShapeDtypeStruct((N, H), jnp.float32),
        grid=(num_blocks,),
        in_specs=[pl.BlockSpec((node_block, R, H), lambda i: (i, 0, 0))],
        out_specs=pl.BlockSpec((node_block, H), lambda i: (i, 0)),
        compiler_params=pltpu.CompilerParams(
            dimension_semantics=semantics,
            vmem_limit_bytes=vmem_limit,
        ),
        # Scheduling hint so XLA overlaps this small mem-bound call with the
        # surrounding graph-assembly ops.
        cost_estimate=pl.CostEstimate(
            flops=N * R * H,
            transcendentals=0,
            bytes_accessed=N * R * H * in_bytes + N * H * 4,
        ),
    )(x)
    return out


# ----------------------------------------------------------------------------
# Graph assembly glue (mirrors _genNode / _genEdge / _genGraph structure).
# ----------------------------------------------------------------------------
def build_hetero_graph(node_hidden_states, n_protocol, n_sign, n_treat):
    N = n_protocol + n_sign + n_treat
    assert node_hidden_states.shape[0] == N

    # Hot path: per-node sentence embeddings via the Pallas fusion kernel.
    node_feat = fuse_embeddings(node_hidden_states)        # (N, H) f32

    # Split node features by type (protocol / sign(impression) / treatment),
    # matching _genGraph's p_feat / s_feat / t_feat stacking.
    p_feat = node_feat[:n_protocol]
    s_feat = node_feat[n_protocol:n_protocol + n_sign]
    t_feat = node_feat[n_protocol + n_sign:]

    # TODO(synk): edge discovery in the original comes from parsed dataframes /
    # JSON protocol maps (pure string processing); here we build a deterministic
    # synthetic bipartite topology instead.
    p_ids = jnp.arange(n_protocol, dtype=jnp.int32)
    phs_src = jnp.concatenate([p_ids, p_ids])                       # protocol -> sign
    phs_dst = jnp.concatenate([p_ids % n_sign, (p_ids + 3) % n_sign])
    pst_src = jnp.concatenate([p_ids, p_ids])                       # protocol -> treatment
    pst_dst = jnp.concatenate([(2 * p_ids) % n_treat, (p_ids + 1) % n_treat])

    graph = {
        ("protocol", "x"): p_feat,
        ("impression", "x"): s_feat,
        ("treatment", "x"): t_feat,
        ("protocol", "has", "impression"): jnp.stack([phs_src, phs_dst]),
        ("protocol", "suggests", "treatment"): jnp.stack([pst_src, pst_dst]),
        ("impression", "indicates", "protocol"): jnp.stack([phs_dst, phs_src]),
        ("treatment", "is suggested by", "protocol"): jnp.stack([pst_dst, pst_src]),
    }
    return graph


# ----------------------------------------------------------------------------
# main
# ----------------------------------------------------------------------------
if __name__ == "__main__":
    key = jax.random.PRNGKey(0)

    # Small, forward-consistent shapes:
    #   8 protocol + 8 sign + 8 treatment nodes, 6 BERT hidden-state layers,
    #   8 tokens per node "sentence", hidden size 128 (lane-dense last dim).
    n_protocol, n_sign, n_treat = 8, 8, 8
    N = n_protocol + n_sign + n_treat
    L, T, H = 6, 8, 128

    # bf16 in HBM (halves the memory-bound kernel's traffic); f32 accumulate in-kernel.
    hidden_states = jax.random.normal(key, (N, L, T, H), dtype=jnp.float32)
    hidden_states = hidden_states.astype(jnp.bfloat16)

    graph = build_hetero_graph(hidden_states, n_protocol, n_sign, n_treat)
    jax.block_until_ready(graph)

    # Correctness check vs. pure-JAX reference of bertEmbedding.fusion('SUM').
    x32 = hidden_states.astype(jnp.float32)
    ref = jnp.mean(jnp.sum(x32[:, L - 4:, :, :], axis=1), axis=1)
    got = jnp.concatenate(
        [graph[("protocol", "x")], graph[("impression", "x")], graph[("treatment", "x")]],
        axis=0,
    )
    assert got.shape == (N, H) and got.dtype == jnp.float32
    assert jnp.allclose(got, ref, atol=1e-4, rtol=1e-4)
    assert graph[("protocol", "has", "impression")].shape == (2, 2 * n_protocol)

    print("KERNEL_OK")
</pallas_src>

<mosaic_0001>
module attributes {stable_mosaic.version = 11 : i64} {
  func.func @fusion_kernel(%arg0: i32, %arg1: memref<24x32x128xbf16, #tpu.memory_space<vmem>>, %arg2: memref<24x128xf32, #tpu.memory_space<vmem>>) attributes {dimension_semantics = [#tpu.dimension_semantics<parallel>], iteration_bounds = array<i64: 1>, scalar_prefetch = 0 : i64, scratch_operands = 0 : i64, tpu.core_type = #tpu.core_type<tc>, window_params = [{transform_indices = @transform_0, window_bounds = array<i64: 24, 32, 128>}, {transform_indices = @transform_1, window_bounds = array<i64: 24, 128>}]} {
    %c0 = arith.constant 0 : index
    %c0_0 = arith.constant 0 : index
    %c0_1 = arith.constant 0 : index
    %0 = vector.load %arg1[%c0, %c0_0, %c0_1] : memref<24x32x128xbf16, #tpu.memory_space<vmem>>, vector<24x32x128xbf16>
    %1 = arith.extf %0 : vector<24x32x128xbf16> to vector<24x32x128xf32>
    %cst = arith.constant dense<0.000000e+00> : vector<24x128xf32>
    %2 = vector.multi_reduction <add>, %1, %cst [1] : vector<24x32x128xf32> to vector<24x128xf32>
    %cst_2 = arith.constant 1.250000e-01 : f32
    %3 = vector.broadcast %cst_2 : f32 to vector<24x128xf32>
    %4 = arith.mulf %2, %3 : vector<24x128xf32>
    %c0_3 = arith.constant 0 : index
    %c0_4 = arith.constant 0 : index
    %5 = vector.load %arg2[%c0_3, %c0_4] : memref<24x128xf32, #tpu.memory_space<vmem>>, vector<24x128xf32>
    tpu.vector_store %arg2[%c0_3, %c0_4], %4 {strides = array<i32>} : memref<24x128xf32, #tpu.memory_space<vmem>>, vector<24x128xf32>,
    return
  }
  func.func @transform_0(%arg0: i32) -> (i32, i32, i32) {
    %c0_i32 = arith.constant 0 : i32
    %c0_i32_0 = arith.constant 0 : i32
    %c0_i32_1 = arith.constant 0 : i32
    return %arg0, %c0_i32, %c0_i32_0 : i32, i32, i32
  }
  func.func @transform_1(%arg0: i32) -> (i32, i32) {
    %c0_i32 = arith.constant 0 : i32
    %c0_i32_0 = arith.constant 0 : i32
    return %arg0, %c0_i32 : i32, i32
  }
}

</mosaic_0001>

<bundles_post_ra>
// kernel: tpu_custom_call.1
= control target key start
LH: loop header
LB: loop body
LE: loop exit
PB: predicated region body
PF: predicated region fallthrough
CT: control target
= control target key end

     0   :  { %6 = vsyncpa [#allocation3], 0  ;;  %s1327_s0 = inlined_call_operand.hbm [shape: bf16[24,32,128], index: 0, kind: input, shape index: {}]   ;;  %s1328_s1 = inlined_call_operand.hbm [shape: f32[24,128], index: 1, kind: output, shape index: {}]  }
   0x1   :  { %7 = vsyncpa [#allocation4], 0  ;;  %s12_s8 = sshll.u32 %s1327_s0, 4  ;;  %s831_s9 = smov [#allocation2]   ;;  %s13_s8 = int_to_ptr.hbm [resolvable:$true] %s12_s8 }
   0x2   :  { %s14_s10 = sshll.u32 %s831_s9, 4  ;;  %s832_s11 = smov 64   ;;  %s15_s10 = int_to_ptr.vmem [resolvable:$true] %s14_s10 }
   0x3   :  { %s833_s12 = smov 4  }
   0x4   :  { %20 = dma.hbm_to_vmem [thread:$0]  %s13_s8, 6144, %s15_s10, [#allocation3], %s832_s11, %s832_s11, %s833_s12  }
   0x5   :  { %827 = dma.done.wait [#allocation3], 6144  }
   0x6   :  { %828 = vsyncadd [#allocation3], 4294961152  ;;  %v850_v0 = vld [vmem:[#allocation2] sm:$0xff]   ;;  %v852_v1 = vld [vmem:[#allocation2 + $0x8] sm:$0xff]   ;;  %vm481_vm0 = vcmask 1041409   ;;  %vm483_vm1 = vcmask 1042434  }
   0x7   :  { %v854_v2 = vld [vmem:[#allocation2 + $0x10] sm:$0xff]   ;;  %v536_v3 = vunpack.c.l.bf16 %v850_v0  ;;  %v857_v4 = vld [vmem:[#allocation2 + $0x18] sm:$0xff]   ;;  %v859_v5 = vld [vmem:[#allocation2 + $0x20] sm:$0xff]   ;;  %v537_v7 = vunpack.c.h.bf16 %v850_v0  ;;  %vm485_vm2 = vcmask 1043459   ;;  %vm487_vm3 = vcmask 1044484   ;;  %s834_s0 = smov [#allocation5]  }
   0x8   :  { %v861_v6 = vld [vmem:[#allocation2 + $0x28] sm:$0xff]   ;;  %v544_v10 = vunpack.c.l.bf16 %v854_v2  ;;  %v867_v11 = vld [vmem:[#allocation2 + $0x30] sm:$0xff]   ;;  %v869_v12 = vld [vmem:[#allocation2 + $0x38] sm:$0xff]   ;;  %v545_v14 = vunpack.c.h.bf16 %v854_v2  ;;  %v552_v17 = vunpack.c.l.bf16 %v859_v5  ;;  %v553_v20 = vunpack.c.h.bf16 %v859_v5  ;;  %s519_s13 = sshll.u32 %s834_s0, 4  ;;  %s521_s16 = sshll.u32 %s1328_s1, 4  ;;  %s520_s13 = int_to_ptr.vmem [resolvable:$true] %s519_s13  ;;  %s522_s16 = int_to_ptr.hbm [resolvable:$true] %s521_s16 }
   0x9   :  { %v871_v13 = vld [vmem:[#allocation2 + $0x40] sm:$0xff]   ;;  %v877_v18 = vld [vmem:[#allocation2 + $0x48] sm:$0xff]   ;;  %v879_v19 = vld [vmem:[#allocation2 + $0x50] sm:$0xff]   ;;  %v560_v23 = vunpack.c.l.bf16 %v867_v11  ;;  %v217_v44 = vadd.f32 %v537_v7, %v536_v3  ;;  %v1335_v15 = vunpack.c.h.bf16 %v867_v11  ;;  %vm489_vm4 = vcmask 1045509   ;;  %s835_s1 = smov 128   ;;  %s836_s17 = smov 8  }
   0xa   :  { %v885_v24 = vld [vmem:[#allocation2 + $0x58] sm:$0xff]   ;;  %v887_v25 = vld [vmem:[#allocation2 + $0x60] sm:$0xff]   ;;  %v893_v30 = vld [vmem:[#allocation2 + $0x68] sm:$0xff]   ;;  %v226_v50 = vadd.f32 %v545_v14, %v544_v10  ;;  %v235_v27 = vadd.f32 %v553_v20, %v552_v17  ;;  %v1336_v57 = vunpack.c.l.bf16 %v871_v13  ;;  %v1337_v0 = vunpack.c.h.bf16 %v871_v13 }
   0xb   :  { %v895_v31 = vld [vmem:[#allocation2 + $0x70] sm:$0xff]   ;;  %v901_v36 = vld [vmem:[#allocation2 + $0x78] sm:$0xff]   ;;  %v903_v37 = vld [vmem:[#allocation2 + $0x80] sm:$0xff]   ;;  %v244_v26 = vadd.f32 %v1335_v15, %v560_v23  ;;  %v1338_v7 = vunpack.c.l.bf16 %v879_v19  ;;  %v1339_v2 = vunpack.c.h.bf16 %v879_v19  ;;  %v1340_v14 = vunpack.c.l.bf16 %v887_v25 }
   0xc   :  { %v909_v42 = vld [vmem:[#allocation2 + $0x88] sm:$0xff]   ;;  %v911_v43 = vld [vmem:[#allocation2 + $0x90] sm:$0xff]   ;;  %v917_v48 = vld [vmem:[#allocation2 + $0x98] sm:$0xff]   ;;  %v253_v3 = vadd.f32 %v1337_v0, %v1336_v57  ;;  %v1341_v5 = vunpack.c.h.bf16 %v887_v25  ;;  %v1342_v20 = vunpack.c.l.bf16 %v895_v31  ;;  %v1343_v11 = vunpack.c.h.bf16 %v895_v31 }
   0xd   :  { %v919_v49 = vld [vmem:[#allocation2 + $0xa0] sm:$0xff]   ;;  %v925_v54 = vld [vmem:[#allocation2 + $0xa8] sm:$0xff]   ;;  %v927_v55 = vld [vmem:[#allocation2 + $0xb0] sm:$0xff]   ;;  %v262_v10 = vadd.f32 %v1339_v2, %v1338_v7  ;;  %v1344_v23 = vunpack.c.l.bf16 %v852_v1  ;;  %v1345_v13 = vunpack.c.l.bf16 %v857_v4  ;;  %v1346_v0 = vunpack.c.l.bf16 %v861_v6 }
   0xe   :  { %v933_v60 = vld [vmem:[#allocation2 + $0xb8] sm:$0xff]   ;;  %v935_v61 = vld [vmem:[#allocation2 + $0xc0] sm:$0xff]   ;;  %v941_v46 = vld [vmem:[#allocation2 + $0xc8] sm:$0xff]   ;;  %v271_v17 = vadd.f32 %v1341_v5, %v1340_v14  ;;  %v280_v15 = vadd.f32 %v1343_v11, %v1342_v20  ;;  %v1347_v7 = vunpack.c.l.bf16 %v869_v12  ;;  %v1348_v25 = vunpack.c.l.bf16 %v877_v18 }
   0xf   :  { %v943_v56 = vld [vmem:[#allocation2 + $0xd0] sm:$0xff]   ;;  %v949_v34 = vld [vmem:[#allocation2 + $0xd8] sm:$0xff]   ;;  %v951_v62 = vld [vmem:[#allocation2 + $0xe0] sm:$0xff]   ;;  %v218_v29 = vadd.f32 %v1344_v23, %v217_v44  ;;  %v227_v57 = vadd.f32 %v1345_v13, %v226_v50  ;;  %v236_v19 = vadd.f32 %v1346_v0, %v235_v27  ;;  %v1349_v5 = vunpack.c.l.bf16 %v885_v24 }
  0x10   :  { %v957_v22 = vld [vmem:[#allocation2 + $0xe8] sm:$0xff]   ;;  %v959_v58 = vld [vmem:[#allocation2 + $0xf0] sm:$0xff]   ;;  %v965_v9 = vld [vmem:[#allocation2 + $0xf8] sm:$0xff]   ;;  %v245_v2 = vadd.f32 %v1347_v7, %v244_v26  ;;  %v254_v14 = vadd.f32 %v1348_v25, %v253_v3  ;;  %v1350_v31 = vunpack.c.l.bf16 %v893_v30  ;;  %v1351_v44 = vunpack.c.l.bf16 %v901_v36 }
  0x11   :  { %v967_v53 = vld [vmem:[#allocation2 + $0x100] sm:$0xff]   ;;  %v973_v45 = vld [vmem:[#allocation2 + $0x108] sm:$0xff]   ;;  %v975_v59 = vld [vmem:[#allocation2 + $0x110] sm:$0xff]   ;;  %v263_v38 = vadd.f32 %v1349_v5, %v262_v10  ;;  %v1352_v50 = vunpack.c.h.bf16 %v852_v1  ;;  %v1353_v27 = vunpack.c.h.bf16 %v857_v4  ;;  %v1354_v26 = vunpack.c.h.bf16 %v861_v6 }
  0x12   :  { %v981_v33 = vld [vmem:[#allocation2 + $0x118] sm:$0xff]   ;;  %v983_v52 = vld [vmem:[#allocation2 + $0x120] sm:$0xff]   ;;  %v989_v21 = vld [vmem:[#allocation2 + $0x128] sm:$0xff]   ;;  %v272_v20 = vadd.f32 %v1350_v31, %v271_v17  ;;  %v281_v11 = vadd.f32 %v1351_v44, %v280_v15  ;;  %v1355_v3 = vunpack.c.h.bf16 %v869_v12  ;;  %v1356_v10 = vunpack.c.h.bf16 %v877_v18 }
  0x13   :  { %v991_v40 = vld [vmem:[#allocation2 + $0x130] sm:$0xff]   ;;  %v997_v8 = vld [vmem:[#allocation2 + $0x138] sm:$0xff]   ;;  %v999_v28 = vld [vmem:[#allocation2 + $0x140] sm:$0xff]   ;;  %v219_v23 = vadd.f32 %v1352_v50, %v218_v29  ;;  %v228_v13 = vadd.f32 %v1353_v27, %v227_v57  ;;  %v237_v0 = vadd.f32 %v1354_v26, %v236_v19  ;;  %v1357_v17 = vunpack.c.h.bf16 %v885_v24 }
  0x14   :  { %v1005_v47 = vld [vmem:[#allocation2 + $0x148] sm:$0xff]   ;;  %v1007_v16 = vld [vmem:[#allocation2 + $0x150] sm:$0xff]   ;;  %v1013_v41 = vld [vmem:[#allocation2 + $0x158] sm:$0xff]   ;;  %v246_v7 = vadd.f32 %v1355_v3, %v245_v2  ;;  %v255_v25 = vadd.f32 %v1356_v10, %v254_v14  ;;  %v1358_v15 = vunpack.c.h.bf16 %v893_v30  ;;  %v1359_v1 = vunpack.c.h.bf16 %v901_v36 }
  0x15   :  { %1333 = vst [vmem:[#allocation8_spill] sm:$0xff] %v1013_v41  ;;  %v1015_v51 = vld [vmem:[#allocation2 + $0x160] sm:$0xff]   ;;  %v1021_v35 = vld [vmem:[#allocation2 + $0x168] sm:$0xff]   ;;  %v1023_v39 = vld [vmem:[#allocation2 + $0x170] sm:$0xff]   ;;  %v264_v5 = vadd.f32 %v1357_v17, %v263_v38  ;;  %v220_v4 = vrot.slane %v219_v23, 4  ;;  %v229_v57 = vrot.slane %v228_v13, 4 }
  0x16   :  { %1334 = vst [vmem:[#allocation9_spill] sm:$0xff] %v1021_v35  ;;  %v273_v31 = vadd.f32 %v1358_v15, %v272_v20  ;;  %v282_v29 = vadd.f32 %v1359_v1, %v281_v11  ;;  %v238_v44 = vrot.slane %v237_v0, 4  ;;  %v247_v6 = vrot.slane %v246_v7, 4  ;;  %v1101_v32 = vld [vmem:[#allocation2 + $0x178] sm:$0xff]  }
  0x17   :  { %v256_v19 = vrot.slane %v255_v25, 4  ;;  %v265_v50 = vrot.slane %v264_v5, 4  ;;  %v221_v27 = vadd.f32 %v220_v4, %v219_v23  ;;  %v230_v18 = vadd.f32 %v229_v57, %v228_v13 }
  0x18   :  { %v274_v12 = vrot.slane %v273_v31, 4  ;;  %v283_v2 = vrot.slane %v282_v29, 4  ;;  %v239_v14 = vadd.f32 %v238_v44, %v237_v0  ;;  %v248_v26 = vadd.f32 %v247_v6, %v246_v7 }
  0x19   :  { %v257_v24 = vadd.f32 %v256_v19, %v255_v25  ;;  %v266_v38 = vadd.f32 %v265_v50, %v264_v5  ;;  %v222_v20 = vrot.slane %v221_v27, 2  ;;  %v231_v10 = vrot.slane %v230_v18, 2 }
  0x1a   :  { %v275_v3 = vadd.f32 %v274_v12, %v273_v31  ;;  %v284_v30 = vadd.f32 %v283_v2, %v282_v29  ;;  %v240_v36 = vrot.slane %v239_v14, 2  ;;  %v249_v11 = vrot.slane %v248_v26, 2 }
  0x1b   :  { %v258_v17 = vrot.slane %v257_v24, 2  ;;  %v267_v15 = vrot.slane %v266_v38, 2  ;;  %v223_v35 = vadd.f32 %v222_v20, %v221_v27  ;;  %v232_v41 = vadd.f32 %v231_v10, %v230_v18 }
  0x1c   :  { %v276_v1 = vrot.slane %v275_v3, 2  ;;  %v285_v63 = vrot.slane %v284_v30, 2  ;;  %v241_v23 = vadd.f32 %v240_v36, %v239_v14  ;;  %v250_v13 = vadd.f32 %v249_v11, %v248_v26 }
  0x1d   :  { %v259_v0 = vadd.f32 %v258_v17, %v257_v24  ;;  %v1103_v7 = vadd.f32 %v267_v15, %v266_v38  ;;  %v224_v31 = vrot.slane %v223_v35, 1  ;;  %v233_v29 = vrot.slane %v232_v41, 1 }
  0x1e   :  { %v1105_v25 = vadd.f32 %v276_v1, %v275_v3  ;;  %v1107_v5 = vadd.f32 %v285_v63, %v284_v30  ;;  %v242_v4 = vrot.slane %v241_v23, 1  ;;  %v251_v57 = vrot.slane %v250_v13, 1 }
  0x1f   :  { %v721_v44 = vunpack.c.h.bf16 %v1023_v39  ;;  %v724_v6 = vunpack.c.l.bf16 %v1101_v32  ;;  %v725_v19 = vunpack.c.h.bf16 %v1101_v32  ;;  %v260_v50 = vrot.slane %v259_v0, 1 }
  0x20   :  { %v1112_v12 = vadd.f32 %v224_v31, %v223_v35  ;;  %v269_v2 = vrot.slane %v1103_v7, 1  ;;  %v278_v27 = vrot.slane %v1105_v25, 1  ;;  %v287_v63 = vrot.slane %v1107_v5, 1 }
  0x21   :  { %v1117_v18 = vadd.f32 %v233_v29, %v232_v41  ;;  %v1119_v14 = vadd.f32 %v242_v4, %v241_v23  ;;  %v1121_v26 = vadd.f32 %v251_v57, %v250_v13  ;;  %v1123_v24 = vadd.f32 %v260_v50, %v259_v0 }
  0x22   :  { %v1360_v38 = vunpack.c.l.bf16 %v903_v37  ;;  %v1361_v3 = vunpack.c.h.bf16 %v903_v37  ;;  %v1362_v30 = vunpack.c.l.bf16 %v911_v43  ;;  %v1363_v20 = vunpack.c.h.bf16 %v911_v43 }
  0x23   :  { %v1364_v36 = vunpack.c.l.bf16 %v919_v49  ;;  %v1365_v41 = vunpack.c.h.bf16 %v919_v49  ;;  %v1366_v17 = vunpack.c.l.bf16 %v927_v55  ;;  %v1367_v15 = vunpack.c.h.bf16 %v927_v55 }
  0x24   :  { %v289_v35 = vadd.f32 %v1361_v3, %v1360_v38  ;;  %v298_v10 = vadd.f32 %v1363_v20, %v1362_v30  ;;  %v1368_v23 = vunpack.c.l.bf16 %v935_v61  ;;  %v1369_v37 = vunpack.c.h.bf16 %v935_v61 }
  0x25   :  { %v307_v11 = vadd.f32 %v1365_v41, %v1364_v36  ;;  %v316_v1 = vadd.f32 %v1367_v15, %v1366_v17  ;;  %v1370_v0 = vunpack.c.l.bf16 %v943_v56  ;;  %v1371_v43 = vunpack.c.h.bf16 %v943_v56 }
  0x26   :  { %v325_v13 = vadd.f32 %v1369_v37, %v1368_v23  ;;  %v1372_v29 = vunpack.c.l.bf16 %v951_v62  ;;  %v1373_v49 = vunpack.c.h.bf16 %v951_v62  ;;  %v1374_v57 = vunpack.c.l.bf16 %v959_v58 }
  0x27   :  { %v334_v31 = vadd.f32 %v1371_v43, %v1370_v0  ;;  %v1375_v55 = vunpack.c.h.bf16 %v959_v58  ;;  %v1376_v38 = vunpack.c.l.bf16 %v909_v42  ;;  %v1377_v61 = vunpack.c.l.bf16 %v917_v48 }
  0x28   :  { %v343_v4 = vadd.f32 %v1373_v49, %v1372_v29  ;;  %v1378_v20 = vunpack.c.l.bf16 %v925_v54  ;;  %v1379_v36 = vunpack.c.l.bf16 %v933_v60  ;;  %v1380_v62 = vunpack.c.l.bf16 %v941_v46 }
  0x29   :  { %v352_v50 = vadd.f32 %v1375_v55, %v1374_v57  ;;  %v290_v3 = vadd.f32 %v1376_v38, %v289_v35  ;;  %v299_v30 = vadd.f32 %v1377_v61, %v298_v10  ;;  %v1381_v15 = vunpack.c.l.bf16 %v949_v34 }
  0x2a   :  { %v308_v56 = vadd.f32 %v1378_v20, %v307_v11  ;;  %v317_v41 = vadd.f32 %v1379_v36, %v316_v1  ;;  %v326_v17 = vadd.f32 %v1380_v62, %v325_v13  ;;  %v1382_v58 = vunpack.c.l.bf16 %v957_v22 }
  0x2b   :  { %v335_v23 = vadd.f32 %v1381_v15, %v334_v31  ;;  %v1383_v35 = vunpack.c.l.bf16 %v965_v9  ;;  %v1384_v10 = vunpack.c.h.bf16 %v909_v42  ;;  %v1385_v11 = vunpack.c.h.bf16 %v917_v48 }
  0x2c   :  { %v344_v37 = vadd.f32 %v1382_v58, %v343_v4  ;;  %v1386_v1 = vunpack.c.h.bf16 %v925_v54  ;;  %v1387_v13 = vunpack.c.h.bf16 %v933_v60  ;;  %v1388_v31 = vunpack.c.h.bf16 %v941_v46 }
  0x2d   :  { %v353_v0 = vadd.f32 %v1383_v35, %v352_v50  ;;  %v291_v43 = vadd.f32 %v1384_v10, %v290_v3  ;;  %v300_v29 = vadd.f32 %v1385_v11, %v299_v30  ;;  %v1389_v4 = vunpack.c.h.bf16 %v949_v34 }
  0x2e   :  { %v309_v49 = vadd.f32 %v1386_v1, %v308_v56  ;;  %v318_v57 = vadd.f32 %v1387_v13, %v317_v41  ;;  %v327_v55 = vadd.f32 %v1388_v31, %v326_v17  ;;  %v1390_v50 = vunpack.c.h.bf16 %v957_v22 }
  0x2f   :  { %v336_v38 = vadd.f32 %v1389_v4, %v335_v23  ;;  %v1391_v42 = vunpack.c.h.bf16 %v965_v9  ;;  %v292_v48 = vrot.slane %v291_v43, 4  ;;  %v301_v30 = vrot.slane %v300_v29, 4 }
  0x30   :  { %v345_v61 = vadd.f32 %v1390_v50, %v344_v37  ;;  %v310_v20 = vrot.slane %v309_v49, 4  ;;  %v319_v54 = vrot.slane %v318_v57, 4  ;;  %v328_v56 = vrot.slane %v327_v55, 4 }
  0x31   :  { %v354_v3 = vadd.f32 %v1391_v42, %v353_v0  ;;  %v337_v36 = vrot.slane %v336_v38, 4  ;;  %v293_v62 = vadd.f32 %v292_v48, %v291_v43  ;;  %v302_v46 = vadd.f32 %v301_v30, %v300_v29 }
  0x32   :  { %v346_v60 = vrot.slane %v345_v61, 4  ;;  %v311_v17 = vadd.f32 %v310_v20, %v309_v49  ;;  %v320_v15 = vadd.f32 %v319_v54, %v318_v57  ;;  %v329_v34 = vadd.f32 %v328_v56, %v327_v55 }
  0x33   :  { %v355_v41 = vrot.slane %v354_v3, 4  ;;  %v338_v23 = vadd.f32 %v337_v36, %v336_v38  ;;  %v294_v37 = vrot.slane %v293_v62, 2  ;;  %v303_v35 = vrot.slane %v302_v46, 2 }
  0x34   :  { %v347_v58 = vadd.f32 %v346_v60, %v345_v61  ;;  %v312_v9 = vrot.slane %v311_v17, 2  ;;  %v321_v0 = vrot.slane %v320_v15, 2  ;;  %v330_v10 = vrot.slane %v329_v34, 2 }
  0x35   :  { %v356_v22 = vadd.f32 %v355_v41, %v354_v3  ;;  %v339_v11 = vrot.slane %v338_v23, 2  ;;  %v295_v31 = vadd.f32 %v294_v37, %v293_v62  ;;  %v304_v4 = vadd.f32 %v303_v35, %v302_v46 }
  0x36   :  { %v348_v1 = vrot.slane %v347_v58, 2  ;;  %v313_v50 = vadd.f32 %v312_v9, %v311_v17  ;;  %v322_v42 = vadd.f32 %v321_v0, %v320_v15  ;;  %v331_v43 = vadd.f32 %v330_v10, %v329_v34 }
  0x37   :  { %v357_v13 = vrot.slane %v356_v22, 2  ;;  %v1189_v29 = vadd.f32 %v339_v11, %v338_v23  ;;  %v296_v55 = vrot.slane %v295_v31, 1  ;;  %v305_v38 = vrot.slane %v304_v4, 1 }
  0x38   :  { %v1191_v49 = vadd.f32 %v348_v1, %v347_v58  ;;  %v314_v61 = vrot.slane %v313_v50, 1  ;;  %v323_v3 = vrot.slane %v322_v42, 1  ;;  %v1198_v48 = vadd.f32 %v269_v2, %v1103_v7 }
  0x39   :  { %v1193_v57 = vadd.f32 %v357_v13, %v356_v22  ;;  %v1203_v30 = vadd.f32 %v278_v27, %v1105_v25  ;;  %v1208_v20 = vadd.f32 %v287_v63, %v1107_v5  ;;  %v332_v54 = vrot.slane %v331_v43, 1 }
  0x3a   :  { %v1210_v56 = vadd.f32 %v296_v55, %v295_v31  ;;  %v341_v36 = vrot.slane %v1189_v29, 1  ;;  %v350_v60 = vrot.slane %v1191_v49, 1  ;;  %v1215_v2 = vadd.f32 %v305_v38, %v304_v4 }
  0x3b   :  { %v359_v7 = vrot.slane %v1193_v57, 1  ;;  %v1217_v41 = vadd.f32 %v314_v61, %v313_v50  ;;  %v1219_v25 = vadd.f32 %v323_v3, %v322_v42  ;;  %v1221_v27 = vadd.f32 %v332_v54, %v331_v43  ;;  %v1412_v3 = vld [vmem:[#allocation8_spill] sm:$0xff] }
  0x3c   :  { %v1392_v5 = vunpack.c.l.bf16 %v967_v53  ;;  %v1393_v63 = vunpack.c.h.bf16 %v967_v53  ;;  %v1394_v46 = vunpack.c.l.bf16 %v975_v59  ;;  %v1395_v17 = vunpack.c.h.bf16 %v975_v59 }
  0x3d   :  { %v1396_v34 = vunpack.c.l.bf16 %v983_v52  ;;  %v1397_v23 = vunpack.c.h.bf16 %v983_v52  ;;  %v1398_v22 = vunpack.c.l.bf16 %v991_v40  ;;  %v1399_v37 = vunpack.c.h.bf16 %v991_v40 }
  0x3e   :  { %v361_v62 = vadd.f32 %v1393_v63, %v1392_v5  ;;  %v370_v15 = vadd.f32 %v1395_v17, %v1394_v46  ;;  %v1400_v9 = vunpack.c.l.bf16 %v999_v28  ;;  %v1401_v53 = vunpack.c.h.bf16 %v999_v28 }
  0x3f   :  { %v379_v58 = vadd.f32 %v1397_v23, %v1396_v34  ;;  %v388_v35 = vadd.f32 %v1399_v37, %v1398_v22  ;;  %v1402_v10 = vunpack.c.l.bf16 %v1007_v16  ;;  %v1403_v59 = vunpack.c.h.bf16 %v1007_v16 }
  0x40   :  { %v397_v0 = vadd.f32 %v1401_v53, %v1400_v9  ;;  %v1404_v1 = vunpack.c.l.bf16 %v1015_v51  ;;  %v1405_v52 = vunpack.c.h.bf16 %v1015_v51  ;;  %v1406_v31 = vunpack.c.l.bf16 %v1023_v39  ;;  %v1414_v39 = vld [vmem:[#allocation9_spill] sm:$0xff] }
  0x41   :  { %v406_v11 = vadd.f32 %v1403_v59, %v1402_v10  ;;  %v1407_v4 = vunpack.c.l.bf16 %v973_v45  ;;  %v1408_v28 = vunpack.c.l.bf16 %v981_v33  ;;  %v1409_v43 = vunpack.c.l.bf16 %v989_v21 }
  0x42   :  { %v415_v13 = vadd.f32 %v1405_v52, %v1404_v1  ;;  %v424_v40 = vadd.f32 %v721_v44, %v1406_v31  ;;  %v1410_v55 = vunpack.c.l.bf16 %v997_v8  ;;  %v1411_v51 = vunpack.c.l.bf16 %v1005_v47 }
  0x43   :  { %v362_v50 = vadd.f32 %v1407_v4, %v361_v62  ;;  %v371_v42 = vadd.f32 %v1408_v28, %v370_v15  ;;  %v380_v16 = vadd.f32 %v1409_v43, %v379_v58  ;;  %v1413_v54 = vunpack.c.l.bf16 %v1412_v3 }
  0x44   :  { %v389_v38 = vadd.f32 %v1410_v55, %v388_v35  ;;  %v398_v61 = vadd.f32 %v1411_v51, %v397_v0  ;;  %v1415_v44 = vunpack.c.l.bf16 %v1414_v39  ;;  %v425_v62 = vadd.f32 %v724_v6, %v424_v40 }
  0x45   :  { %v407_v5 = vadd.f32 %v1413_v54, %v406_v11  ;;  %v1416_v46 = vunpack.c.h.bf16 %v973_v45  ;;  %v1417_v15 = vunpack.c.h.bf16 %v981_v33  ;;  %v1418_v23 = vunpack.c.h.bf16 %v989_v21 }
  0x46   :  { %v416_v63 = vadd.f32 %v1415_v44, %v415_v13  ;;  %v1419_v22 = vunpack.c.h.bf16 %v997_v8  ;;  %v1420_v35 = vunpack.c.h.bf16 %v1005_v47  ;;  %v1421_v53 = vunpack.c.h.bf16 %v1412_v3 }
  0x47   :  { %v363_v17 = vadd.f32 %v1416_v46, %v362_v50  ;;  %v372_v34 = vadd.f32 %v1417_v15, %v371_v42  ;;  %v381_v58 = vadd.f32 %v1418_v23, %v380_v16  ;;  %v1422_v6 = vunpack.c.h.bf16 %v1414_v39 }
  0x48   :  { %v390_v37 = vadd.f32 %v1419_v22, %v389_v38  ;;  %v399_v9 = vadd.f32 %v1420_v35, %v398_v61  ;;  %v408_v0 = vadd.f32 %v1421_v53, %v407_v5  ;;  %v426_v45 = vadd.f32 %v725_v19, %v425_v62 }
  0x49   :  { %v417_v10 = vadd.f32 %v1422_v6, %v416_v63  ;;  %v364_v33 = vrot.slane %v363_v17, 4  ;;  %v373_v59 = vrot.slane %v372_v34, 4  ;;  %v382_v11 = vrot.slane %v381_v58, 4 }
  0x4a   :  { %v391_v21 = vrot.slane %v390_v37, 4  ;;  %v400_v1 = vrot.slane %v399_v9, 4  ;;  %v409_v52 = vrot.slane %v408_v0, 4  ;;  %v427_v13 = vrot.slane %v426_v45, 4 }
  0x4b   :  { %v418_v8 = vrot.slane %v417_v10, 4  ;;  %v365_v31 = vadd.f32 %v364_v33, %v363_v17  ;;  %v374_v47 = vadd.f32 %v373_v59, %v372_v34  ;;  %v383_v40 = vadd.f32 %v382_v11, %v381_v58 }
  0x4c   :  { %v392_v4 = vadd.f32 %v391_v21, %v390_v37  ;;  %v401_v50 = vadd.f32 %v400_v1, %v399_v9  ;;  %v410_v28 = vadd.f32 %v409_v52, %v408_v0  ;;  %v428_v43 = vadd.f32 %v427_v13, %v426_v45 }
  0x4d   :  { %v419_v42 = vadd.f32 %v418_v8, %v417_v10  ;;  %v366_v16 = vrot.slane %v365_v31, 2  ;;  %v375_v55 = vrot.slane %v374_v47, 2  ;;  %v384_v32 = vrot.slane %v383_v40, 2 }
  0x4e   :  { %v393_v19 = vrot.slane %v392_v4, 2  ;;  %v402_v38 = vrot.slane %v401_v50, 2  ;;  %v411_v51 = vrot.slane %v410_v28, 2  ;;  %v429_v3 = vrot.slane %v428_v43, 2 }
  0x4f   :  { %v420_v61 = vrot.slane %v419_v42, 2  ;;  %v367_v54 = vadd.f32 %v366_v16, %v365_v31  ;;  %v376_v5 = vadd.f32 %v375_v55, %v374_v47  ;;  %v385_v39 = vadd.f32 %v384_v32, %v383_v40 }
  0x50   :  { %v394_v44 = vadd.f32 %v393_v19, %v392_v4  ;;  %v403_v63 = vadd.f32 %v402_v38, %v401_v50  ;;  %v412_v62 = vadd.f32 %v411_v51, %v410_v28  ;;  %v430_v17 = vadd.f32 %v429_v3, %v428_v43 }
  0x51   :  { %v421_v46 = vadd.f32 %v420_v61, %v419_v42  ;;  %v368_v15 = vrot.slane %v367_v54, 1  ;;  %v377_v34 = vrot.slane %v376_v5, 1  ;;  %v386_v23 = vrot.slane %v385_v39, 1 }
  0x52   :  { %v395_v58 = vrot.slane %v394_v44, 1  ;;  %v404_v22 = vrot.slane %v403_v63, 1  ;;  %v413_v37 = vrot.slane %v412_v62, 1  ;;  %v431_v9 = vrot.slane %v430_v17, 1 }
  0x53   :  { %v422_v35 = vrot.slane %v421_v46, 1  ;;  %v342_v53 = vadd.f32 %v341_v36, %v1189_v29  ;;  %v351_v0 = vadd.f32 %v350_v60, %v1191_v49  ;;  %v360_v6 = vadd.f32 %v359_v7, %v1193_v57 }
  0x54   :  { %v369_v10 = vadd.f32 %v368_v15, %v367_v54  ;;  %v378_v45 = vadd.f32 %v377_v34, %v376_v5  ;;  %v387_v33 = vadd.f32 %v386_v23, %v385_v39  ;;  %v396_v59 = vadd.f32 %v395_v58, %v394_v44 }
  0x55   :  { %v405_v11 = vadd.f32 %v404_v22, %v403_v63  ;;  %v414_v21 = vadd.f32 %v413_v37, %v412_v62  ;;  %v423_v1 = vadd.f32 %v422_v35, %v421_v46  ;;  %v432_v52 = vadd.f32 %v431_v9, %v430_v17 }
  0x56   :  { %v433_v8 = vmul.f32 0.125, %v1112_v12  ;;  %v434_v29 = vmul.f32 0.125, %v1117_v18  ;;  %v435_v36 = vmul.f32 0.125, %v1119_v14  ;;  %v436_v49 = vmul.f32 0.125, %v1121_v26 }
  0x57   :  { %v437_v60 = vmul.f32 0.125, %v1123_v24  ;;  %v438_v57 = vmul.f32 0.125, %v1198_v48  ;;  %v439_v7 = vmul.f32 0.125, %v1203_v30  ;;  %v440_v13 = vmul.f32 0.125, %v1208_v20 }
  0x58   :  { %v441_v31 = vmul.f32 0.125, %v1210_v56  ;;  %v442_v47 = vmul.f32 0.125, %v1215_v2  ;;  %v443_v12 = vmul.f32 0.125, %v1217_v41  ;;  %v444_v18 = vmul.f32 0.125, %v1219_v25 }
  0x59   :  { %v445_v14 = vmul.f32 0.125, %v1221_v27  ;;  %v446_v40 = vmul.f32 0.125, %v342_v53  ;;  %v447_v26 = vmul.f32 0.125, %v351_v0  ;;  %v449_v4 = vmul.f32 0.125, %v369_v10 }
  0x5a   :  { %v450_v24 = vmul.f32 0.125, %v378_v45  ;;  %v448_v50 = vmul.f32 0.125, %v360_v6  ;;  %v451_v48 = vmul.f32 0.125, %v387_v33  ;;  %v452_v28 = vmul.f32 0.125, %v396_v59 }
  0x5b   :  { %v453_v30 = vmul.f32 0.125, %v405_v11  ;;  %v454_v42 = vmul.f32 0.125, %v414_v21  ;;  %v455_v20 = vmul.f32 0.125, %v423_v1  ;;  %v456_v56 = vmul.f32 0.125, %v432_v52 }
  0x5c   :  { %v482_v2 = vsel %vm481_vm0, %v434_v29, %v433_v8  ;;  %v495_v25 = vsel %vm481_vm0, %v442_v47, %v441_v31  ;;  %v502_v27 = vsel %vm481_vm0, %v450_v24, %v449_v4  ;;  %vm491_vm5 = vcmask 1046534  }
  0x5d   :  { %v484_v41 = vsel %vm483_vm1, %v435_v36, %v482_v2  ;;  %v496_v16 = vsel %vm483_vm1, %v443_v12, %v495_v25  ;;  %v503_v55 = vsel %vm483_vm1, %v451_v48, %v502_v27  ;;  %vm493_vm6 = vcmask 1047559  }
  0x5e   :  { %v486_v43 = vsel %vm485_vm2, %v436_v49, %v484_v41  ;;  %v497_v19 = vsel %vm485_vm2, %v444_v18, %v496_v16  ;;  %v504_v38 = vsel %vm485_vm2, %v452_v28, %v503_v55 }
  0x5f   :  { %v488_v32 = vsel %vm487_vm3, %v437_v60, %v486_v43  ;;  %v498_v61 = vsel %vm487_vm3, %v445_v14, %v497_v19  ;;  %v505_v3 = vsel %vm487_vm3, %v453_v30, %v504_v38 }
  0x60   :  { %v490_v51 = vsel %vm489_vm4, %v438_v57, %v488_v32  ;;  %v499_v5 = vsel %vm489_vm4, %v446_v40, %v498_v61  ;;  %v506_v39 = vsel %vm489_vm4, %v454_v42, %v505_v3 }
  0x61   :  { %v492_v54 = vsel %vm491_vm5, %v439_v7, %v490_v51  ;;  %v500_v63 = vsel %vm491_vm5, %v447_v26, %v499_v5  ;;  %v507_v62 = vsel %vm491_vm5, %v455_v20, %v506_v39 }
  0x62   :  { %v494_v44 = vsel %vm493_vm6, %v440_v13, %v492_v54  ;;  %v501_v46 = vsel %vm493_vm6, %v448_v50, %v500_v63  ;;  %v508_v17 = vsel %vm493_vm6, %v456_v56, %v507_v62 }
  0x63   :  { %512 = vst [vmem:[#allocation5] sm:$0xff] %v494_v44 }
  0x64   :  { %513 = vst [vmem:[#allocation5 + $0x8] sm:$0xff] %v501_v46 }
  0x65   :  { %514 = vst [vmem:[#allocation5 + $0x10] sm:$0xff] %v508_v17 }
  0x66   :  { %527 = dma.vmem_to_hbm [thread:$0]  %s520_s13, 384, %s522_s16, [#allocation4], %s835_s1, %s835_s1, %s836_s17  }
  0x67   :  { %829 = dma.done.wait [#allocation4], 384  }
  0x68   :  { %830 = vsyncadd [#allocation4], 4294966912 }
  0x69   :  { %532 = vsyncpa [#allocation3], 1 }
  0x6a   :  { %533 = vsyncpa [#allocation4], 1 }

</bundles_post_ra>
